<compile_context>
chip_gen: v7x
topology: tpu7x:2x2x1
jax: 0.10.0
libtpu: 0.0.40
codegen_flags: <defaults>
</compile_context>

<pallas_src>
import jax
import jax.numpy as jnp
from jax.experimental import pallas as pl
from jax.experimental.pallas import tpu as pltpu


def critic_kernel(x_ref, w1_ref, b1_ref, w2_ref, b2_ref, o_ref):
    # x_ref : (C, TM)  batch tile, batch on the lane axis
    # w1_ref: (H, C)   resident (PyTorch layout of fc[0].weight)
    # b1_ref: (H, 1)   resident
    # w2_ref: (H, 1)   resident (v.weight transposed)
    # b2_ref: (1, 1)   SMEM scalar
    # o_ref : (1, TM)  lane-dense output tile
    h = jnp.dot(w1_ref[...], x_ref[...], preferred_element_type=jnp.float32)  # MXU
    h = jnp.tanh(h + b1_ref[...])                                             # (H, TM) f32
    # Value head (N=1) off the MXU: multiply + sublane reduce rides VPU/XLU slots.
    v = jnp.sum(h * w2_ref[...], axis=0, keepdims=True) + b2_ref[0, 0]        # (1, TM)
    o_ref[...] = v.astype(o_ref.dtype)


def critic_forward(x, w1, b1, w2, b2, *, block_batch=1024):
    """x: (B, C); w1: (H, C); b1: (H,); w2: (1, H); b2: (1,). Returns (B, 1)."""
    B, C = x.shape
    H = w1.shape[0]

    # Batch tile: multiple of 128 lanes, capped so the per-step footprint
    # (x tile x2 buffers + (H, TM) f32 hidden + out tile) stays well inside
    # v7x's 64 MiB VMEM while still amortizing the ~0.35 us step overhead.
    tm = min(block_batch, ((B + 127) // 128) * 128)
    b_pad = pl.cdiv(B, tm) * tm

    xt = x.T                                            # (C, B), batch-on-lanes
    if b_pad != B:
        xt = jnp.pad(xt, ((0, 0), (0, b_pad - B)))      # padded rows sliced off below

    b1c = b1.reshape(H, 1).astype(jnp.float32)
    w2c = w2.reshape(H, 1).astype(jnp.float32)
    b2c = b2.reshape(1, 1).astype(jnp.float32)

    dsize = jnp.dtype(x.dtype).itemsize
    cost = pl.CostEstimate(
        flops=2 * b_pad * C * H + 2 * b_pad * H,
        transcendentals=b_pad * H,
        bytes_accessed=b_pad * C * dsize + b_pad * dsize + (H * C) * dsize + (2 * H + 1) * 4,
    )

    out = pl.pallas_call(
        critic_kernel,
        out_shape=jax.ShapeDtypeStruct((1, b_pad), x.dtype),
        grid=(b_pad // tm,),
        in_specs=[
            pl.BlockSpec((C, tm), lambda i: (0, i)),             # x^T tile per step
            pl.BlockSpec((H, C), lambda i: (0, 0)),              # w1 resident
            pl.BlockSpec((H, 1), lambda i: (0, 0)),              # b1 resident
            pl.BlockSpec((H, 1), lambda i: (0, 0)),              # w2 resident
            pl.BlockSpec((1, 1), lambda i: (0, 0),
                         memory_space=pltpu.MemorySpace.SMEM),   # b2 scalar
        ],
        out_specs=pl.BlockSpec((1, tm), lambda i: (0, i)),       # lane-dense output
        compiler_params=pltpu.CompilerParams(
            dimension_semantics=("parallel",),  # shard batch across TCs (v7x megacore)
        ),
        cost_estimate=cost,
    )(xt, w1.astype(x.dtype), b1c, w2c, b2c)

    return out[0, :B].reshape(B, 1)


def init_params(key, in_channels, hidden):
    # PyTorch-layout params with torch's default uniform(-1/sqrt(fan_in), 1/sqrt(fan_in)).
    k1, k2, k3, k4 = jax.random.split(key, 4)
    bound1 = 1.0 / jnp.sqrt(in_channels)
    bound2 = 1.0 / jnp.sqrt(hidden)
    w1 = jax.random.uniform(k1, (hidden, in_channels), jnp.float32, -bound1, bound1)
    b1 = jax.random.uniform(k2, (hidden,), jnp.float32, -bound1, bound1)
    w2 = jax.random.uniform(k3, (1, hidden), jnp.float32, -bound2, bound2)
    b2 = jax.random.uniform(k4, (1,), jnp.float32, -bound2, bound2)
    return w1, b1, w2, b2


if __name__ == "__main__":
    in_channels = 32
    hidden = 256   # fixed by the module
    batch = 2      # tiny demo batch; kernel pads up to one 128-lane tile

    key = jax.random.PRNGKey(0)
    kx, kp = jax.random.split(key)
    x = jax.random.normal(kx, (batch, in_channels), jnp.float32)
    w1, b1, w2, b2 = init_params(kp, in_channels, hidden)

    out = critic_forward(x, w1, b1, w2, b2)
    out = jax.block_until_ready(out)

    # Pure-JAX reference of the PyTorch forward pass (y = x @ W.T + b).
    ref = jnp.tanh(x @ w1.T + b1) @ w2.T + b2
    assert out.shape == (batch, 1)
    assert jnp.allclose(out, ref, atol=1e-4, rtol=1e-4)

    print("KERNEL_OK")
</pallas_src>

<mosaic_0001>
module attributes {stable_mosaic.version = 11 : i64} {
  func.func @critic_kernel(%arg0: i32, %arg1: memref<32x128xf32, #tpu.memory_space<vmem>>, %arg2: memref<256x32xf32, #tpu.memory_space<vmem>>, %arg3: memref<256x1xf32, #tpu.memory_space<vmem>>, %arg4: memref<256x1xf32, #tpu.memory_space<vmem>>, %arg5: memref<1x1xf32, #tpu.memory_space<smem>>, %arg6: memref<1x128xf32, #tpu.memory_space<vmem>>) attributes {dimension_semantics = [#tpu.dimension_semantics<parallel>], iteration_bounds = array<i64: 1>, scalar_prefetch = 0 : i64, scratch_operands = 0 : i64, tpu.core_type = #tpu.core_type<tc>, window_params = [{transform_indices = @transform_0, window_bounds = array<i64: 32, 128>}, {pipeline_mode = #tpu.pipeline_mode<synchronous>, transform_indices = @transform_1, window_bounds = array<i64: 256, 32>}, {pipeline_mode = #tpu.pipeline_mode<synchronous>, transform_indices = @transform_2, window_bounds = array<i64: 256, 1>}, {pipeline_mode = #tpu.pipeline_mode<synchronous>, transform_indices = @transform_3, window_bounds = array<i64: 256, 1>}, {transform_indices = @transform_4, window_bounds = array<i64: 1, 1>}, {transform_indices = @transform_5, window_bounds = array<i64: 1, 128>}]} {
    %c0 = arith.constant 0 : index
    %c0_0 = arith.constant 0 : index
    %0 = vector.load %arg2[%c0, %c0_0] : memref<256x32xf32, #tpu.memory_space<vmem>>, vector<256x32xf32>
    %c0_1 = arith.constant 0 : index
    %c0_2 = arith.constant 0 : index
    %1 = vector.load %arg1[%c0_1, %c0_2] : memref<32x128xf32, #tpu.memory_space<vmem>>, vector<32x128xf32>
    %cst = arith.constant dense<0.000000e+00> : vector<256x128xf32>
    %2 = tpu.matmul %0, %1, %cst {dimension_numbers = #tpu.dot_dimension_numbers<[1], [0], [0], [1], [0, 0, 1, 1], [], []>} : vector<256x32xf32>, vector<32x128xf32>, vector<256x128xf32> -> vector<256x128xf32>
    %c0_3 = arith.constant 0 : index
    %c0_4 = arith.constant 0 : index
    %3 = vector.load %arg3[%c0_3, %c0_4] : memref<256x1xf32, #tpu.memory_space<vmem>>, vector<256x1xf32>
    %4 = vector.broadcast %3 : vector<256x1xf32> to vector<256x128xf32>
    %5 = arith.addf %2, %4 : vector<256x128xf32>
    %6 = math.tanh %5 : vector<256x128xf32>
    %c0_5 = arith.constant 0 : index
    %c0_6 = arith.constant 0 : index
    %7 = vector.load %arg4[%c0_5, %c0_6] : memref<256x1xf32, #tpu.memory_space<vmem>>, vector<256x1xf32>
    %8 = vector.broadcast %7 : vector<256x1xf32> to vector<256x128xf32>
    %9 = arith.mulf %6, %8 : vector<256x128xf32>
    %cst_7 = arith.constant dense<0.000000e+00> : vector<128xf32>
    %10 = vector.multi_reduction <add>, %9, %cst_7 [0] : vector<256x128xf32> to vector<128xf32>
    %11 = vector.shape_cast %10 : vector<128xf32> to vector<1x128xf32>
    %c0_8 = arith.constant 0 : index
    %c0_9 = arith.constant 0 : index
    %12 = memref.load %arg5[%c0_8, %c0_9] : memref<1x1xf32, #tpu.memory_space<smem>>
    %13 = vector.broadcast %12 : f32 to vector<1x128xf32>
    %14 = arith.addf %11, %13 : vector<1x128xf32>
    %c0_10 = arith.constant 0 : index
    %c0_11 = arith.constant 0 : index
    %15 = vector.load %arg6[%c0_10, %c0_11] : memref<1x128xf32, #tpu.memory_space<vmem>>, vector<1x128xf32>
    tpu.vector_store %arg6[%c0_10, %c0_11], %14 {strides = array<i32>} : memref<1x128xf32, #tpu.memory_space<vmem>>, vector<1x128xf32>,
    return
  }
  func.func @transform_0(%arg0: i32) -> (i32, i32) {
    %c0_i32 = arith.constant 0 : i32
    %c0_i32_0 = arith.constant 0 : i32
    return %c0_i32, %arg0 : i32, i32
  }
  func.func @transform_1(%arg0: i32) -> (i32, i32) {
    %c0_i32 = arith.constant 0 : i32
    %c0_i32_0 = arith.constant 0 : i32
    %c0_i32_1 = arith.constant 0 : i32
    return %c0_i32, %c0_i32_0 : i32, i32
  }
  func.func @transform_2(%arg0: i32) -> (i32, i32) {
    %c0_i32 = arith.constant 0 : i32
    %c0_i32_0 = arith.constant 0 : i32
    %c0_i32_1 = arith.constant 0 : i32
    return %c0_i32, %c0_i32_0 : i32, i32
  }
  func.func @transform_3(%arg0: i32) -> (i32, i32) {
    %c0_i32 = arith.constant 0 : i32
    %c0_i32_0 = arith.constant 0 : i32
    %c0_i32_1 = arith.constant 0 : i32
    return %c0_i32, %c0_i32_0 : i32, i32
  }
  func.func @transform_4(%arg0: i32) -> (i32, i32) {
    %c0_i32 = arith.constant 0 : i32
    %c0_i32_0 = arith.constant 0 : i32
    %c0_i32_1 = arith.constant 0 : i32
    return %c0_i32, %c0_i32_0 : i32, i32
  }
  func.func @transform_5(%arg0: i32) -> (i32, i32) {
    %c0_i32 = arith.constant 0 : i32
    %c0_i32_0 = arith.constant 0 : i32
    return %c0_i32, %arg0 : i32, i32
  }
}

</mosaic_0001>

<bundles_post_ra>
// kernel: tpu_custom_call.1
= control target key start
LH: loop header
LB: loop body
LE: loop exit
PB: predicated region body
PF: predicated region fallthrough
CT: control target
= control target key end

     0   :  { %v1111_v3 = vmov 0   ;;  %vm250_vm0 = vcmask 261120   ;;  %s1661_s0 = inlined_call_operand.vmem [shape: f32[32,128], index: 0, kind: input, shape index: {}]   ;;  %s1662_s1 = inlined_call_operand.vmem [shape: f32[256,32], index: 1, kind: input, shape index: {}]   ;;  %s1663_s2 = inlined_call_operand.vmem [shape: f32[256,1], index: 2, kind: input, shape index: {}]   ;;  %s1664_s3 = inlined_call_operand.vmem [shape: f32[256,1], index: 3, kind: input, shape index: {}]   ;;  %s1665_s4 = inlined_call_operand.<no memory space> [shape: f32[1,1], index: 4, kind: input, shape index: {}]   ;;  %s1666_s5 = inlined_call_operand.hbm [shape: f32[1,128], index: 5, kind: output, shape index: {}]  }
   0x1   :  { %v60_v0 = vld [vmem:[%s1663_s2 + $0x10] sm:$0xff]  ;;  %v58_v1 = vld [vmem:[%s1663_s2] sm:$0xff]  ;;  %1022 = vset.pattern.permute.xlu1 %v1111_v3  ;;  %1021 = vset.pattern.permute.xlu0 %v1111_v3  ;;  %v55_v4 = vld [vmem:[%s1661_s0 + $0x8] sm:$0xff] }
   0x2   :  { %v54_v2 = vld [vmem:[%s1661_s0] sm:$0xff]  ;;  %102 = vperm.xlu1 %1022, %v60_v0   ;;  %92 = vperm.xlu0 %1021, %v58_v1   ;;  %v56_v6 = vld [vmem:[%s1661_s0 + $0x10] sm:$0xff]  ;;  %v57_v7 = vld [vmem:[%s1661_s0 + $0x18] sm:$0xff] }
   0x3   :  { %v1007_v5 = vpack.c.bf16 %v55_v4, %v54_v2  ;;  %v61_v8 = vld [vmem:[%s1663_s2 + $0x18] sm:$0xff]  ;;  %v59_v9 = vld [vmem:[%s1663_s2 + $0x8] sm:$0xff]  ;;  %v1011_v10 = vpack.c.bf16 %v57_v7, %v56_v6  ;;  %v22_v11 = vld [vmem:[%s1662_s1] sm:$0xff] }
   0x4   :  { %v38_v12 = vld [vmem:[%s1662_s1 + $0x80] sm:$0xff]  ;;  %v63_v13 = vld [vmem:[%s1663_s2 + $0x28] sm:$0xff]  ;;  %959 = vmatprep.mubr.msk.f32.mxu0 %vm250_vm0, %v22_v11  ;;  %v24_v17 = vld [vmem:[%s1662_s1 + $0x10] sm:$0xff] }
   0x5   :  { %1008 = vmatprep.subr.bf16.mxu0 %v1007_v5  ;;  %1015 = vmatprep.subr.bf16.mxu1 %v1007_v5  ;;  %v62_v14 = vld [vmem:[%s1663_s2 + $0x20] sm:$0xff]  ;;  %v23_v15 = vld [vmem:[%s1662_s1 + $0x8] sm:$0xff]  ;;  %v40_v18 = vld [vmem:[%s1662_s1 + $0x90] sm:$0xff] }
   0x6   :  { %1010 = vmatpush3.bf16.msra.mxu0 %v1007_v5  ;;  %1017 = vmatpush3.bf16.msra.mxu1 %v1007_v5  ;;  %v39_v16 = vld [vmem:[%s1662_s1 + $0x88] sm:$0xff]  ;;  %v65_v19 = vld [vmem:[%s1663_s2 + $0x38] sm:$0xff]  ;;  %v64_v20 = vld [vmem:[%s1663_s2 + $0x30] sm:$0xff] }
   0x7   :  { %107 = vperm.xlu1 %1022, %v61_v8   ;;  %97 = vperm.xlu0 %1021, %v59_v9   ;;  %v25_v21 = vld [vmem:[%s1662_s1 + $0x18] sm:$0xff]  ;;  %v26_v23 = vld [vmem:[%s1662_s1 + $0x20] sm:$0xff]  ;;  %v67_v25 = vld [vmem:[%s1663_s2 + $0x48] sm:$0xff] }
   0x8   :  { %1012 = vmatprep.subr.bf16.mxu0 %v1011_v10  ;;  %1016 = vmatprep.subr.bf16.mxu1 %v1011_v10  ;;  %v41_v22 = vld [vmem:[%s1662_s1 + $0x98] sm:$0xff]  ;;  %v42_v24 = vld [vmem:[%s1662_s1 + $0xa0] sm:$0xff]  ;;  %v27_v27 = vld [vmem:[%s1662_s1 + $0x28] sm:$0xff] }
   0x9   :  { %983 = vmatprep.mubr.msk.f32.mxu1 %vm250_vm0, %v38_v12  ;;  %v66_v26 = vld [vmem:[%s1663_s2 + $0x40] sm:$0xff]  ;;  %v43_v28 = vld [vmem:[%s1662_s1 + $0xa8] sm:$0xff]  ;;  %v28_v29 = vld [vmem:[%s1662_s1 + $0x30] sm:$0xff] }
   0xa   :  { %1014 = vmatpush3.bf16.msra.mxu0 %v1011_v10  ;;  %1018 = vmatpush3.bf16.msra.mxu1 %v1011_v10  ;;  %v44_v30 = vld [vmem:[%s1662_s1 + $0xb0] sm:$0xff]  ;;  %v69_v31 = vld [vmem:[%s1663_s2 + $0x58] sm:$0xff]  ;;  %v30_v35 = vld [vmem:[%s1662_s1 + $0x40] sm:$0xff] }
   0xb   :  { %117 = vperm.xlu1 %1022, %v63_v13   ;;  %112 = vperm.xlu0 %1021, %v62_v14   ;;  %v68_v32 = vld [vmem:[%s1663_s2 + $0x50] sm:$0xff]  ;;  %v29_v33 = vld [vmem:[%s1662_s1 + $0x38] sm:$0xff]  ;;  %v46_v36 = vld [vmem:[%s1662_s1 + $0xc0] sm:$0xff] }
   0xc   :  { %v45_v34 = vld [vmem:[%s1662_s1 + $0xb8] sm:$0xff]  ;;  %v71_v37 = vld [vmem:[%s1663_s2 + $0x68] sm:$0xff]  ;;  %v70_v38 = vld [vmem:[%s1663_s2 + $0x60] sm:$0xff] }
   0xd   :  { %960 = vmatmul.mubr.msk.f32.vlgmr.msra.gmra.mrb[0].mxu0 %vm250_vm0, %v23_v15  ;;  %984 = vmatmul.mubr.msk.f32.vlgmr.msra.gmra.mrb[0].mxu1 %vm250_vm0, %v39_v16  ;;  %v31_v39 = vld [vmem:[%s1662_s1 + $0x48] sm:$0xff]  ;;  %v32_v41 = vld [vmem:[%s1662_s1 + $0x50] sm:$0xff]  ;;  %v73_v43 = vld [vmem:[%s1663_s2 + $0x78] sm:$0xff] }
   0xe   :  { %962 = vmatprep.mubr.msk.f32.mxu0 %vm250_vm0, %v24_v17  ;;  %986 = vmatprep.mubr.msk.f32.mxu1 %vm250_vm0, %v40_v18  ;;  %v47_v40 = vld [vmem:[%s1662_s1 + $0xc8] sm:$0xff]  ;;  %v48_v42 = vld [vmem:[%s1662_s1 + $0xd0] sm:$0xff]  ;;  %v33_v45 = vld [vmem:[%s1662_s1 + $0x58] sm:$0xff] }
   0xf   :  { %127 = vperm.xlu1 %1022, %v65_v19   ;;  %122 = vperm.xlu0 %1021, %v64_v20   ;;  %v72_v44 = vld [vmem:[%s1663_s2 + $0x70] sm:$0xff]  ;;  %v49_v46 = vld [vmem:[%s1662_s1 + $0xd8] sm:$0xff]  ;;  %v34_v47 = vld [vmem:[%s1662_s1 + $0x60] sm:$0xff] }
  0x10   :  { %v50_v48 = vld [vmem:[%s1662_s1 + $0xe0] sm:$0xff]  ;;  %v75_v49 = vld [vmem:[%s1663_s2 + $0x88] sm:$0xff] }
  0x11   :  { %963 = vmatmul.mubr.msk.f32.gmra.mrb[2].mxu0 %vm250_vm0, %v25_v21  ;;  %987 = vmatmul.mubr.msk.f32.gmra.mrb[2].mxu1 %vm250_vm0, %v41_v22  ;;  %v74_v50 = vld [vmem:[%s1663_s2 + $0x80] sm:$0xff]  ;;  %v35_v51 = vld [vmem:[%s1662_s1 + $0x68] sm:$0xff] }
  0x12   :  { %965 = vmatprep.mubr.msk.f32.mxu0 %vm250_vm0, %v26_v23  ;;  %989 = vmatprep.mubr.msk.f32.mxu1 %vm250_vm0, %v42_v24  ;;  %v51_v52 = vld [vmem:[%s1662_s1 + $0xe8] sm:$0xff] }
  0x13   :  { %137 = vperm.xlu1 %1022, %v67_v25   ;;  %132 = vperm.xlu0 %1021, %v66_v26  }
  0x15   :  { %966 = vmatmul.mubr.msk.f32.gmra.mrb[4].mxu0 %vm250_vm0, %v27_v27  ;;  %990 = vmatmul.mubr.msk.f32.gmra.mrb[4].mxu1 %vm250_vm0, %v43_v28 }
  0x16   :  { %968 = vmatprep.mubr.msk.f32.mxu0 %vm250_vm0, %v28_v29  ;;  %992 = vmatprep.mubr.msk.f32.mxu1 %vm250_vm0, %v44_v30 }
  0x17   :  { %147 = vperm.xlu1 %1022, %v69_v31   ;;  %142 = vperm.xlu0 %1021, %v68_v32  }
  0x19   :  { %969 = vmatmul.mubr.msk.f32.gmra.mrb[6].mxu0 %vm250_vm0, %v29_v33  ;;  %993 = vmatmul.mubr.msk.f32.gmra.mrb[6].mxu1 %vm250_vm0, %v45_v34 }
  0x1a   :  { %971 = vmatprep.mubr.msk.f32.mxu0 %vm250_vm0, %v30_v35  ;;  %995 = vmatprep.mubr.msk.f32.mxu1 %vm250_vm0, %v46_v36 }
  0x1b   :  { %157 = vperm.xlu1 %1022, %v71_v37   ;;  %152 = vperm.xlu0 %1021, %v70_v38  }
  0x1d   :  { %972 = vmatmul.mubr.msk.f32.gmra.mrb[8].mxu0 %vm250_vm0, %v31_v39  ;;  %996 = vmatmul.mubr.msk.f32.gmra.mrb[8].mxu1 %vm250_vm0, %v47_v40 }
  0x1e   :  { %974 = vmatprep.mubr.msk.f32.mxu0 %vm250_vm0, %v32_v41  ;;  %998 = vmatprep.mubr.msk.f32.mxu1 %vm250_vm0, %v48_v42 }
  0x1f   :  { %167 = vperm.xlu1 %1022, %v73_v43   ;;  %162 = vperm.xlu0 %1021, %v72_v44  }
  0x21   :  { %975 = vmatmul.mubr.msk.f32.gmra.mrb[10].mxu0 %vm250_vm0, %v33_v45  ;;  %999 = vmatmul.mubr.msk.f32.gmra.mrb[10].mxu1 %vm250_vm0, %v49_v46 }
  0x22   :  { %977 = vmatprep.mubr.msk.f32.mxu0 %vm250_vm0, %v34_v47  ;;  %1001 = vmatprep.mubr.msk.f32.mxu1 %vm250_vm0, %v50_v48 }
  0x23   :  { %11 = vsyncpa [#allocation4], 0  ;;  %177 = vperm.xlu1 %1022, %v75_v49   ;;  %172 = vperm.xlu0 %1021, %v74_v50   ;;  %v36_v53 = vld [vmem:[%s1662_s1 + $0x70] sm:$0xff]  ;;  %v77_v55 = vld [vmem:[%s1663_s2 + $0x98] sm:$0xff]  ;;  %s1112_s7 = smov [#allocation3]  }
  0x24   :  { %v52_v54 = vld [vmem:[%s1662_s1 + $0xf0] sm:$0xff]  ;;  %v37_v57 = vld [vmem:[%s1662_s1 + $0x78] sm:$0xff]  ;;  %v79_v59 = vld [vmem:[%s1663_s2 + $0xa8] sm:$0xff]  ;;  %s875_s8 = sshll.u32 %s1112_s7, 4  ;;  %s876_s8 = int_to_ptr.vmem [resolvable:$true] %s875_s8 }
  0x25   :  { %v76_v56 = vld [vmem:[%s1663_s2 + $0x90] sm:$0xff]  ;;  %978 = vmatmul.mubr.msk.f32.gmra.mrb[12].mxu0 %vm250_vm0, %v35_v51  ;;  %1002 = vmatmul.mubr.msk.f32.gmra.mrb[12].mxu1 %vm250_vm0, %v51_v52  ;;  %v53_v58 = vld [vmem:[%s1662_s1 + $0xf8] sm:$0xff]  ;;  %v78_v60 = vld [vmem:[%s1663_s2 + $0xa0] sm:$0xff]  ;;  %s1087_s9 = scalar_lea.vmem %s876_s8, 16  ;;  %s1091_s10 = scalar_lea.vmem %s876_s8, 32 }
  0x26   :  { %980 = vmatprep.mubr.msk.f32.mxu0 %vm250_vm0, %v36_v53  ;;  %1004 = vmatprep.mubr.msk.f32.mxu1 %vm250_vm0, %v52_v54  ;;  %v81_v61 = vld [vmem:[%s1663_s2 + $0xb8] sm:$0xff]  ;;  %v80_v62 = vld [vmem:[%s1663_s2 + $0xb0] sm:$0xff]  ;;  %v83_v63 = vld [vmem:[%s1663_s2 + $0xc8] sm:$0xff]  ;;  %p1088_p0 = scmp.ne.s32.totalorder %s876_s8, %s1087_s9  ;;  %p1092_p1 = scmp.lt.s32.totalorder %s876_s8, %s876_s8 }
  0x27   :  { %187 = vperm.xlu1 %1022, %v77_v55   ;;  %182 = vperm.xlu0 %1021, %v76_v56   ;;  %v82_v0 = vld [vmem:[%s1663_s2 + $0xc0] sm:$0xff]  ;;  %v85_v1 = vld [vmem:[%s1663_s2 + $0xd8] sm:$0xff]  ;;  %v84_v2 = vld [vmem:[%s1663_s2 + $0xd0] sm:$0xff]  ;;  %p1093_p2 = scmp.lt.s32.totalorder %s1091_s10, %s1087_s9 }
  0x28   :  { %v605_v3 = vld [vmem:[%s1664_s3 + $0x8] sm:$0xff]  ;;  %v604_v4 = vld [vmem:[%s1664_s3] sm:$0xff]  ;;  %v607_v5 = vld [vmem:[%s1664_s3 + $0x18] sm:$0xff] }
  0x29   :  { %981 = vmatmul.mubr.msk.f32.gmra.mrb[14].mxu0 %vm250_vm0, %v37_v57  ;;  %1005 = vmatmul.mubr.msk.f32.gmra.mrb[14].mxu1 %vm250_vm0, %v53_v58  ;;  %v606_v6 = vld [vmem:[%s1664_s3 + $0x10] sm:$0xff]  ;;  %v609_v7 = vld [vmem:[%s1664_s3 + $0x28] sm:$0xff]  ;;  %v608_v8 = vld [vmem:[%s1664_s3 + $0x20] sm:$0xff]  ;;  %p1094_p3 = por %p1093_p2, %p1092_p1 }
  0x2a   :  { %v611_v9 = vld [vmem:[%s1664_s3 + $0x38] sm:$0xff]  ;;  %v610_v10 = vld [vmem:[%s1664_s3 + $0x30] sm:$0xff]  ;;  %v613_v11 = vld [vmem:[%s1664_s3 + $0x48] sm:$0xff] }
  0x2b   :  { %197 = vperm.xlu1 %1022, %v79_v59   ;;  %192 = vperm.xlu0 %1021, %v78_v60   ;;  %v612_v12 = vld [vmem:[%s1664_s3 + $0x40] sm:$0xff]  ;;  %v615_v13 = vld [vmem:[%s1664_s3 + $0x58] sm:$0xff]  ;;  %v614_v14 = vld [vmem:[%s1664_s3 + $0x50] sm:$0xff]  ;;  %p1095_p4 = pnand %p1094_p3, %p1088_p0 }
  0x2c   :  { %v617_v15 = vld [vmem:[%s1664_s3 + $0x68] sm:$0xff]  ;;  %v616_v16 = vld [vmem:[%s1664_s3 + $0x60] sm:$0xff]  ;;  %v619_v17 = vld [vmem:[%s1664_s3 + $0x78] sm:$0xff] }
  0x2d   :  { %v618_v18 = vld [vmem:[%s1664_s3 + $0x70] sm:$0xff]  ;;  %v621_v19 = vld [vmem:[%s1664_s3 + $0x88] sm:$0xff]  ;;  %v620_v20 = vld [vmem:[%s1664_s3 + $0x80] sm:$0xff] }
  0x2e   :  { %v623_v21 = vld [vmem:[%s1664_s3 + $0x98] sm:$0xff]  ;;  %v622_v22 = vld [vmem:[%s1664_s3 + $0x90] sm:$0xff]  ;;  %v625_v23 = vld [vmem:[%s1664_s3 + $0xa8] sm:$0xff] }
  0x2f   :  { %207 = vperm.xlu1 %1022, %v81_v61   ;;  %202 = vperm.xlu0 %1021, %v80_v62   ;;  %v624_v24 = vld [vmem:[%s1664_s3 + $0xa0] sm:$0xff]  ;;  %v626_v25 = vld [vmem:[%s1664_s3 + $0xb0] sm:$0xff]  ;;  %v627_v27 = vld [vmem:[%s1664_s3 + $0xb8] sm:$0xff] }
  0x30   :  { %v86_v26 = vld [vmem:[%s1663_s2 + $0xe0] sm:$0xff]  ;;  %v87_v28 = vld [vmem:[%s1663_s2 + $0xe8] sm:$0xff]  ;;  %v88_v30 = vld [vmem:[%s1663_s2 + $0xf0] sm:$0xff] }
  0x31   :  { %v628_v29 = vld [vmem:[%s1664_s3 + $0xc0] sm:$0xff]  ;;  %v629_v31 = vld [vmem:[%s1664_s3 + $0xc8] sm:$0xff]  ;;  %v89_v32 = vld [vmem:[%s1663_s2 + $0xf8] sm:$0xff] }
  0x32   :  { %v631_v33 = vld [vmem:[%s1664_s3 + $0xd8] sm:$0xff]  ;;  %v630_v34 = vld [vmem:[%s1664_s3 + $0xd0] sm:$0xff]  ;;  %v633_v35 = vld [vmem:[%s1664_s3 + $0xe8] sm:$0xff] }
  0x33   :  { %217 = vperm.xlu1 %1022, %v83_v63   ;;  %212 = vperm.xlu0 %1021, %v82_v0   ;;  %v632_v36 = vld [vmem:[%s1664_s3 + $0xe0] sm:$0xff]  ;;  %v635_v37 = vld [vmem:[%s1664_s3 + $0xf8] sm:$0xff]  ;;  %v634_v38 = vld [vmem:[%s1664_s3 + $0xf0] sm:$0xff] }
  0x37   :  { %227 = vperm.xlu1 %1022, %v85_v1   ;;  %222 = vperm.xlu0 %1021, %v84_v2  }
  0x3b   :  { %643 = vperm.xlu1 %1022, %v605_v3   ;;  %638 = vperm.xlu0 %1021, %v604_v4  }
  0x3f   :  { %653 = vperm.xlu1 %1022, %v607_v5   ;;  %648 = vperm.xlu0 %1021, %v606_v6  }
  0x43   :  { %663 = vperm.xlu1 %1022, %v609_v7   ;;  %658 = vperm.xlu0 %1021, %v608_v8  }
  0x47   :  { %673 = vperm.xlu1 %1022, %v611_v9   ;;  %668 = vperm.xlu0 %1021, %v610_v10  }
  0x4b   :  { %683 = vperm.xlu1 %1022, %v613_v11   ;;  %678 = vperm.xlu0 %1021, %v612_v12  }
  0x4f   :  { %693 = vperm.xlu1 %1022, %v615_v13   ;;  %688 = vperm.xlu0 %1021, %v614_v14  }
  0x53   :  { %703 = vperm.xlu1 %1022, %v617_v15   ;;  %698 = vperm.xlu0 %1021, %v616_v16  }
  0x57   :  { %713 = vperm.xlu1 %1022, %v619_v17   ;;  %708 = vperm.xlu0 %1021, %v618_v18  }
  0x5b   :  { %723 = vperm.xlu1 %1022, %v621_v19   ;;  %718 = vperm.xlu0 %1021, %v620_v20  }
  0x5f   :  { %733 = vperm.xlu1 %1022, %v623_v21   ;;  %728 = vperm.xlu0 %1021, %v622_v22  }
  0x63   :  { %743 = vperm.xlu1 %1022, %v625_v23   ;;  %738 = vperm.xlu0 %1021, %v624_v24  }
  0x67   :  { %748 = vperm.xlu1 %1022, %v626_v25   ;;  %232 = vperm.xlu0 %1021, %v86_v26  }
  0x6b   :  { %753 = vperm.xlu1 %1022, %v627_v27   ;;  %237 = vperm.xlu0 %1021, %v87_v28  }
  0x6f   :  { %758 = vperm.xlu1 %1022, %v628_v29   ;;  %242 = vperm.xlu0 %1021, %v88_v30  }
  0x73   :  { %763 = vperm.xlu1 %1022, %v629_v31   ;;  %247 = vperm.xlu0 %1021, %v89_v32  }
  0x77   :  { %773 = vperm.xlu1 %1022, %v631_v33   ;;  %768 = vperm.xlu0 %1021, %v630_v34  }
  0x7b   :  { %783 = vperm.xlu1 %1022, %v633_v35   ;;  %778 = vperm.xlu0 %1021, %v632_v36  }
  0x7f   :  { %793 = vperm.xlu1 %1022, %v635_v37   ;;  %788 = vperm.xlu0 %1021, %v634_v38  }
  0x81   :  { %v103_v39 = vpop.permute.xlu1 %102  ;;  %v93_v40 = vpop.permute.xlu0 %92 }
  0x86   :  { %v108_v41 = vpop.permute.xlu1 %107  ;;  %v98_v42 = vpop.permute.xlu0 %97 }
  0x8a   :  { %v118_v43 = vpop.permute.xlu1 %117  ;;  %v113_v44 = vpop.permute.xlu0 %112 }
  0x8e   :  { %v1475_v45 = vpop.permute.xlu1 %127  ;;  %v1477_v46 = vpop.permute.xlu0 %122 }
  0x92   :  { %v1479_v47 = vpop.permute.xlu1 %137  ;;  %v1481_v48 = vpop.permute.xlu0 %132 }
  0x96   :  { %v1483_v49 = vpop.permute.xlu1 %147  ;;  %v1485_v50 = vpop.permute.xlu0 %142 }
  0x9a   :  { %v1487_v51 = vpop.permute.xlu1 %157  ;;  %v1489_v52 = vpop.permute.xlu0 %152 }
  0x9e   :  { %v1491_v53 = vpop.permute.xlu1 %167  ;;  %v1493_v54 = vpop.permute.xlu0 %162 }
  0xa2   :  { %v1495_v55 = vpop.permute.xlu1 %177  ;;  %v1497_v56 = vpop.permute.xlu0 %172 }
  0xa6   :  { %v1499_v57 = vpop.permute.xlu1 %187  ;;  %v1501_v58 = vpop.permute.xlu0 %182 }
  0xaa   :  { %v1503_v59 = vpop.permute.xlu1 %197  ;;  %v1505_v60 = vpop.permute.xlu0 %192 }
  0xae   :  { %v1507_v61 = vpop.permute.xlu1 %207  ;;  %v1509_v62 = vpop.permute.xlu0 %202 }
  0xb2   :  { %v1511_v63 = vpop.permute.xlu1 %217  ;;  %v1513_v0 = vpop.permute.xlu0 %212 }
  0xb6   :  { %v1515_v1 = vpop.permute.xlu1 %227  ;;  %v1517_v2 = vpop.permute.xlu0 %222 }
  0xba   :  { %v644_v3 = vpop.permute.xlu1 %643  ;;  %v639_v4 = vpop.permute.xlu0 %638 }
  0xbe   :  { %v1519_v5 = vpop.permute.xlu1 %653  ;;  %v649_v6 = vpop.permute.xlu0 %648 }
  0xc2   :  { %v1521_v7 = vpop.permute.xlu1 %663  ;;  %v1523_v8 = vpop.permute.xlu0 %658 }
  0xc6   :  { %v1525_v9 = vpop.permute.xlu1 %673  ;;  %v1527_v10 = vpop.permute.xlu0 %668 }
  0xca   :  { %v1529_v11 = vpop.permute.xlu1 %683  ;;  %v1531_v12 = vpop.permute.xlu0 %678 }
  0xce   :  { %v1533_v13 = vpop.permute.xlu1 %693  ;;  %v1535_v14 = vpop.permute.xlu0 %688 }
  0xd2   :  { %v1541_v21 = vpop.permute.xlu1 %703  ;;  %v1543_v22 = vpop.permute.xlu0 %698 }
  0xd6   :  { %v1553_v35 = vpop.permute.xlu1 %713  ;;  %v1555_v36 = vpop.permute.xlu0 %708 }
  0xe0   :  { %v961_v15 = vpop.f32.mrb[0].mxu0  ;;  %v1537_v16 = vpop.f32.mrb[0].mxu1 }
  0xe1   :  { %v419_v17 = vadd.f32 %v961_v15, %v98_v42  ;;  %v413_v18 = vpop.f32.mrb[1].mxu0  ;;  %v1539_v19 = vpop.f32.mrb[1].mxu1 }
  0xe2   :  { %v414_v20 = vadd.f32 %v413_v18, %v93_v40 }
  0xe3   :  { %1023 = vtanh.f32 %v419_v17 }
  0xe4   :  { %v964_v23 = vpop.f32.mrb[2].mxu0  ;;  %v1545_v24 = vpop.f32.mrb[2].mxu1  ;;  %1025 = vtanh.f32 %v414_v20 }
  0xe5   :  { %v429_v25 = vadd.f32 %v964_v23, %v108_v41  ;;  %v423_v26 = vpop.f32.mrb[3].mxu0  ;;  %v1547_v27 = vpop.f32.mrb[3].mxu1 }
  0xe6   :  { %v424_v28 = vadd.f32 %v423_v26, %v103_v39 }
  0xe7   :  { %1027 = vtanh.f32 %v429_v25 }
  0xe8   :  { %v967_v29 = vpop.f32.mrb[4].mxu0  ;;  %v1549_v30 = vpop.f32.mrb[4].mxu1  ;;  %1029 = vtanh.f32 %v424_v28 }
  0xe9   :  { %v439_v31 = vadd.f32 %v967_v29, %v118_v43  ;;  %v433_v32 = vpop.f32.mrb[5].mxu0  ;;  %v1551_v33 = vpop.f32.mrb[5].mxu1 }
  0xea   :  { %v434_v34 = vadd.f32 %v433_v32, %v113_v44 }
  0xeb   :  { %1031 = vtanh.f32 %v439_v31 }
  0xec   :  { %v970_v37 = vpop.f32.mrb[6].mxu0  ;;  %v1557_v38 = vpop.f32.mrb[6].mxu1  ;;  %1033 = vtanh.f32 %v434_v34 }
  0xed   :  { %v1024_v40 = vpop.eup %1023  ;;  %v449_v39 = vadd.f32 %v970_v37, %v1475_v45  ;;  %v443_v41 = vpop.f32.mrb[7].mxu0 }
  0xee   :  { %v1560_v42 = vpop.f32.mrb[7].mxu1  ;;  %v797_v43 = vmul.f32 %v1024_v40, %v644_v3  ;;  %v444_v15 = vadd.f32 %v443_v41, %v1477_v46  ;;  %v1026_v17 = vpop.eup %1025 }
  0xef   :  { %v796_v44 = vmul.f32 %v1026_v17, %v639_v4  ;;  %1035 = vtanh.f32 %v449_v39  ;;  %v1569_v3 = vpop.permute.xlu1 %723  ;;  %v1571_v46 = vpop.permute.xlu0 %718 }
  0xf0   :  { %v973_v18 = vpop.f32.mrb[8].mxu0  ;;  %v1563_v20 = vpop.f32.mrb[8].mxu1  ;;  %1037 = vtanh.f32 %v444_v15 }
  0xf1   :  { %v459_v23 = vadd.f32 %v973_v18, %v1479_v47  ;;  %v453_v25 = vpop.f32.mrb[9].mxu0  ;;  %v1566_v26 = vpop.f32.mrb[9].mxu1  ;;  %v828_v45 = vadd.f32 %v797_v43, %v796_v44 }
  0xf2   :  { %v1028_v28 = vpop.eup %1027  ;;  %v454_v29 = vadd.f32 %v453_v25, %v1481_v48 }
  0xf3   :  { %v1030_v31 = vpop.eup %1029  ;;  %1039 = vtanh.f32 %v459_v23  ;;  %v799_v41 = vmul.f32 %v1028_v28, %v1519_v5 }
  0xf4   :  { %v798_v4 = vmul.f32 %v1030_v31, %v649_v6  ;;  %v976_v32 = vpop.f32.mrb[10].mxu0  ;;  %v1573_v34 = vpop.f32.mrb[10].mxu1  ;;  %1041 = vtanh.f32 %v454_v29 }
  0xf5   :  { %v469_v47 = vadd.f32 %v976_v32, %v1483_v49  ;;  %v463_v37 = vpop.f32.mrb[11].mxu0  ;;  %v1576_v40 = vpop.f32.mrb[11].mxu1 }
  0xf6   :  { %v1032_v39 = vpop.eup %1031  ;;  %v829_v48 = vadd.f32 %v828_v45, %v798_v4  ;;  %v464_v43 = vadd.f32 %v463_v37, %v1485_v50  ;;  %v1588_v31 = vpop.permute.xlu1 %733 }
  0xf7   :  { %v1034_v15 = vpop.eup %1033  ;;  %1043 = vtanh.f32 %v469_v47  ;;  %v801_v5 = vmul.f32 %v1032_v39, %v1521_v7 }
  0xf8   :  { %v800_v17 = vmul.f32 %v1034_v15, %v1523_v8  ;;  %v830_v6 = vadd.f32 %v829_v48, %v799_v41  ;;  %v979_v44 = vpop.f32.mrb[12].mxu0  ;;  %v1581_v18 = vpop.f32.mrb[12].mxu1  ;;  %1045 = vtanh.f32 %v464_v43 }
  0xf9   :  { %v479_v49 = vadd.f32 %v979_v44, %v1487_v51  ;;  %v473_v23 = vpop.f32.mrb[13].mxu0  ;;  %v1584_v25 = vpop.f32.mrb[13].mxu1 }
  0xfa   :  { %v1036_v29 = vpop.eup %1035  ;;  %v831_v28 = vadd.f32 %v830_v6, %v800_v17  ;;  %v474_v50 = vadd.f32 %v473_v23, %v1489_v52  ;;  %v1590_v8 = vpop.permute.xlu0 %728 }
  0xfb   :  { %v1038_v45 = vpop.eup %1037  ;;  %1047 = vtanh.f32 %v479_v49  ;;  %v803_v52 = vmul.f32 %v1036_v29, %v1525_v9 }
  0xfc   :  { %v802_v4 = vmul.f32 %v1038_v45, %v1527_v10  ;;  %v832_v32 = vadd.f32 %v831_v28, %v801_v5  ;;  %v982_v47 = vpop.f32.mrb[14].mxu0  ;;  %v1593_v51 = vpop.f32.mrb[14].mxu1  ;;  %1049 = vtanh.f32 %v474_v50  ;;  %v494_v10 = vadd.f32 %v1539_v19, %v1497_v56 }
  0xfd   :  { %v489_v37 = vadd.f32 %v982_v47, %v1491_v53  ;;  %v483_v41 = vpop.f32.mrb[15].mxu0  ;;  %v1596_v7 = vpop.f32.mrb[15].mxu1  ;;  %v499_v53 = vadd.f32 %v1537_v16, %v1495_v55  ;;  %v504_v56 = vadd.f32 %v1547_v27, %v1501_v58  ;;  %v509_v55 = vadd.f32 %v1545_v24, %v1499_v57 }
  0xfe   :  { %v1040_v39 = vpop.eup %1039  ;;  %v833_v48 = vadd.f32 %v832_v32, %v802_v4  ;;  %v484_v43 = vadd.f32 %v483_v41, %v1493_v54  ;;  %v1605_v44 = vpop.permute.xlu0 %738  ;;  %v514_v45 = vadd.f32 %v1551_v33, %v1505_v60  ;;  %v519_v27 = vadd.f32 %v1549_v30, %v1503_v59 }
  0xff   :  { %v1042_v15 = vpop.eup %1041  ;;  %1051 = vtanh.f32 %v489_v37  ;;  %v805_v9 = vmul.f32 %v1040_v39, %v1529_v11  ;;  %v1608_v54 = vpop.permute.xlu1 %743  ;;  %v524_v47 = vadd.f32 %v1560_v42, %v1509_v62  ;;  %v529_v41 = vadd.f32 %v1557_v38, %v1507_v61 }
 0x100   :  { %v804_v17 = vmul.f32 %v1042_v15, %v1531_v12  ;;  %v834_v6 = vadd.f32 %v833_v48, %v803_v52  ;;  %1053 = vtanh.f32 %v484_v43  ;;  %v534_v52 = vadd.f32 %v1566_v26, %v1513_v0 }
 0x101   :  { %v1044_v49 = vpop.eup %1043  ;;  %1055 = vtanh.f32 %v494_v10  ;;  %v539_v48 = vadd.f32 %v1563_v20, %v1511_v63  ;;  %v544_v15 = vadd.f32 %v1576_v40, %v1517_v2 }
 0x102   :  { %v835_v23 = vadd.f32 %v834_v6, %v804_v17  ;;  %v1046_v29 = vpop.eup %1045  ;;  %1057 = vtanh.f32 %v499_v53  ;;  %v807_v5 = vmul.f32 %v1044_v49, %v1533_v13  ;;  %v233_v50 = vpop.permute.xlu0 %232  ;;  %v549_v17 = vadd.f32 %v1573_v34, %v1515_v1 }
 0x103   :  { %v806_v12 = vmul.f32 %v1046_v29, %v1535_v14  ;;  %1059 = vtanh.f32 %v504_v56  ;;  %v749_v14 = vpop.permute.xlu1 %748  ;;  %v554_v6 = vadd.f32 %v1584_v25, %v233_v50 }
 0x104   :  { %v836_v19 = vadd.f32 %v835_v23, %v805_v9  ;;  %1061 = vtanh.f32 %v509_v55 }
 0x105   :  { %v1048_v16 = vpop.eup %1047  ;;  %1063 = vtanh.f32 %v514_v45 }
 0x106   :  { %v837_v28 = vadd.f32 %v836_v19, %v806_v12  ;;  %v1050_v11 = vpop.eup %1049  ;;  %v809_v57 = vmul.f32 %v1048_v16, %v1541_v21  ;;  %1065 = vtanh.f32 %v519_v27 }
 0x107   :  { %v808_v4 = vmul.f32 %v1050_v11, %v1543_v22  ;;  %v238_v22 = vpop.permute.xlu0 %237  ;;  %v754_v21 = vpop.permute.xlu1 %753  ;;  %1067 = vtanh.f32 %v524_v47 }
 0x108   :  { %v838_v58 = vadd.f32 %v837_v28, %v807_v5  ;;  %1069 = vtanh.f32 %v529_v41 }
 0x109   :  { %v1052_v32 = vpop.eup %1051  ;;  %1071 = vtanh.f32 %v534_v52 }
 0x10a   :  { %v839_v24 = vadd.f32 %v838_v58, %v808_v4  ;;  %v1054_v13 = vpop.eup %1053  ;;  %v811_v59 = vmul.f32 %v1052_v32, %v1553_v35  ;;  %1073 = vtanh.f32 %v539_v48 }
 0x10b   :  { %v810_v37 = vmul.f32 %v1054_v13, %v1555_v36  ;;  %v1056_v33 = vpop.eup %1055  ;;  %v243_v35 = vpop.permute.xlu0 %242  ;;  %1075 = vtanh.f32 %v544_v15 }
 0x10c   :  { %v840_v60 = vadd.f32 %v839_v24, %v809_v57  ;;  %v1058_v39 = vpop.eup %1057  ;;  %v812_v62 = vmul.f32 %v1056_v33, %v1571_v46  ;;  %v759_v46 = vpop.permute.xlu1 %758  ;;  %1077 = vtanh.f32 %v549_v17  ;;  %v564_v34 = vadd.f32 %v1596_v7, %v243_v35 }
 0x10d   :  { %v1060_v36 = vpop.eup %1059  ;;  %v813_v43 = vmul.f32 %v1058_v39, %v1569_v3  ;;  %1079 = vtanh.f32 %v554_v6 }
 0x10e   :  { %v841_v30 = vadd.f32 %v840_v60, %v810_v37  ;;  %v1062_v38 = vpop.eup %1061  ;;  %v814_v10 = vmul.f32 %v1060_v36, %v1590_v8  ;;  %v559_v8 = vadd.f32 %v1581_v18, %v238_v22 }
 0x10f   :  { %v1064_v26 = vpop.eup %1063  ;;  %v815_v63 = vmul.f32 %v1062_v38, %v1588_v31  ;;  %v248_v40 = vpop.permute.xlu0 %247 }
 0x110   :  { %v842_v42 = vadd.f32 %v841_v30, %v811_v59  ;;  %v1066_v3 = vpop.eup %1065  ;;  %v816_v53 = vmul.f32 %v1064_v26, %v1605_v44  ;;  %v764_v1 = vpop.permute.xlu1 %763  ;;  %1081 = vtanh.f32 %v559_v8  ;;  %v569_v25 = vadd.f32 %v1593_v51, %v248_v40 }
 0x111   :  { %v1068_v2 = vpop.eup %1067  ;;  %v817_v9 = vmul.f32 %v1066_v3, %v1608_v54  ;;  %1083 = vtanh.f32 %v564_v34 }
 0x112   :  { %v843_v61 = vadd.f32 %v842_v42, %v812_v62  ;;  %v1070_v29 = vpop.eup %1069  ;;  %v818_v31 = vmul.f32 %v1068_v2, %v749_v14  ;;  %1085 = vtanh.f32 %v569_v25 }
 0x113   :  { %v1072_v12 = vpop.eup %1071  ;;  %v819_v44 = vmul.f32 %v1070_v29, %v754_v21  ;;  %v769_v16 = vpop.permute.xlu0 %768 }
 0x114   :  { %v844_v0 = vadd.f32 %v843_v61, %v813_v43  ;;  %v1074_v55 = vpop.eup %1073  ;;  %v820_v18 = vmul.f32 %v1072_v12, %v759_v46  ;;  %v774_v28 = vpop.permute.xlu1 %773  ;;  %v866_v61 = vstv %s1665_s4 }
 0x115   :  { %v1076_v54 = vpop.eup %1075  ;;  %v821_v11 = vmul.f32 %v1074_v55, %v764_v1 }
 0x116   :  { %v845_v20 = vadd.f32 %v844_v0, %v814_v10  ;;  %v1078_v45 = vpop.eup %1077  ;;  %v822_v7 = vmul.f32 %v1076_v54, %v769_v16 }
 0x117   :  { %v1080_v58 = vpop.eup %1079  ;;  %v779_v14 = vpop.permute.xlu0 %778  ;;  %v823_v27 = vmul.f32 %v1078_v45, %v774_v28 }
 0x118   :  { %v846_v49 = vadd.f32 %v845_v20, %v815_v63  ;;  %v784_v57 = vpop.permute.xlu1 %783  ;;  %v824_v24 = vmul.f32 %v1080_v58, %v779_v14 }
 0x11a   :  { %v847_v23 = vadd.f32 %v846_v49, %v816_v53  ;;  %v1082_v51 = vpop.eup %1081 }
 0x11b   :  { %v1084_v47 = vpop.eup %1083  ;;  %v825_v37 = vmul.f32 %v1082_v51, %v784_v57  ;;  %v789_v22 = vpop.permute.xlu0 %788 }
 0x11c   :  { %v848_v56 = vadd.f32 %v847_v23, %v817_v9  ;;  %v1086_v33 = vpop.eup %1085  ;;  %v826_v41 = vmul.f32 %v1084_v47, %v789_v22  ;;  %v794_v30 = vpop.permute.xlu1 %793 }
 0x11d   :  { %v827_v39 = vmul.f32 %v1086_v33, %v794_v30 }
 0x11e   :  { %v849_v19 = vadd.f32 %v848_v56, %v818_v31 }
 0x120   :  { %v850_v5 = vadd.f32 %v849_v19, %v819_v44 }
 0x122   :  { %v851_v50 = vadd.f32 %v850_v5, %v820_v18 }
 0x124   :  { %v852_v4 = vadd.f32 %v851_v50, %v821_v11 }
 0x126   :  { %v853_v32 = vadd.f32 %v852_v4, %v822_v7 }
 0x128   :  { %v854_v13 = vadd.f32 %v853_v32, %v823_v27 }
 0x12a   :  { %v855_v60 = vadd.f32 %v854_v13, %v824_v24 }
 0x12c   :  { %v856_v59 = vadd.f32 %v855_v60, %v825_v37 }
 0x12e   :  { %v857_v21 = vadd.f32 %v856_v59, %v826_v41 }
 0x130   :  { %v858_v52 = vadd.f32 %v857_v21, %v827_v39 }
 0x132   :  { %v859_v62 = vrot.slane %v858_v52, 4 }
 0x134   :  { %v860_v42 = vadd.f32 %v859_v62, %v858_v52 }
 0x136   :  { %v861_v36 = vrot.slane %v860_v42, 2 }
 0x138   :  { %v862_v48 = vadd.f32 %v861_v36, %v860_v42 }
 0x13a   :  { %v863_v43 = vrot.slane %v862_v48, 1 }
 0x13c   :  { %v864_v38 = vadd.f32 %v863_v43, %v862_v48 }
 0x13e   :  { %v867_v35 = vadd.f32 %v866_v61, %v864_v38 }
 0x140   :  { %868 = vst [vmem:[#allocation3] sm:$0x1] %v867_v35 }
 0x141   :  { %1098 = shalt.err (!%p1095_p4)
}
 0x142   :  { %s1099_s12 = scalar_lea.hbm %s1666_s5, 16 }
 0x143   :  { %p1100_p5 = scmp.ne.s32.totalorder %s1666_s5, %s1099_s12  ;;  %p1103_p6 = scmp.lt.u32.totalorder %s1099_s12, %s1666_s5 }
 0x145   :  { %p1105_p7 = pnand %p1103_p6, %p1100_p5 }
 0x147   :  { %1108 = shalt.err (!%p1105_p7)
}
 0x148   :  { %878 = dma.vmem_to_hbm [thread:$0]  %s876_s8, 16, %s1666_s5, [#allocation4]  }
 0x149   :  { %1109 = dma.done.wait [#allocation4], 16  }
 0x14a   :  { %1110 = vsyncadd [#allocation4], 4294967280 }
 0x14b   :  { %882 = vsyncpa [#allocation4], 1 }

</bundles_post_ra>
